<compile_context>
chip_gen: v5e
topology: v5e:2x2
jax: 0.10.0
libtpu: 0.0.40
codegen_flags: <defaults>
</compile_context>

<pallas_src>
import jax
import jax.numpy as jnp
from jax.experimental import pallas as pl
from jax.experimental.pallas import tpu as pltpu  # noqa: F401  (TPU backend)

_LANES = 128          # vreg lane width -> unmasked stores / dense DMA
_MAX_TILE_ROWS = 512  # 512 x 128 f32 = 256 KiB per tile; multiple of 8 sublanes


def _copy_kernel(x_ref, o_ref):
    # Straight pass-through of the current tile.
    o_ref[...] = x_ref[...]


def identity_forward(x: jax.Array) -> jax.Array:
    """Pallas implementation of Identity.forward(x) == x."""
    total = x.size
    if total == 0:
        return x

    if total % _LANES == 0:
        # Lane-dense path: flatten to (rows, 128).
        rows = total // _LANES
        xf = x.reshape(rows, _LANES)
        # Full-extent block when small (always legal); otherwise 512-row tiles
        # (multiple of 8 sublanes, so the (8, 128) rule holds).
        tile_rows = rows if rows <= _MAX_TILE_ROWS else _MAX_TILE_ROWS
        grid = (pl.cdiv(rows, tile_rows),)
        y = pl.pallas_call(
            _copy_kernel,
            out_shape=jax.ShapeDtypeStruct((rows, _LANES), x.dtype),
            grid=grid,
            in_specs=[pl.BlockSpec((tile_rows, _LANES), lambda i: (i, 0))],
            out_specs=pl.BlockSpec((tile_rows, _LANES), lambda i: (i, 0)),
            # Output aliases the input buffer: zero extra HBM when donated.
            input_output_aliases={0: 0},
        )(xf)
        return y.reshape(x.shape)

    # Fallback for awkward sizes: single whole-array block (block shape equal
    # to the full array dims satisfies the (8, 128) rule without padding);
    # no grid -> zero per-step overhead.
    ndim = x.ndim
    return pl.pallas_call(
        _copy_kernel,
        out_shape=jax.ShapeDtypeStruct(x.shape, x.dtype),
        in_specs=[pl.BlockSpec(x.shape, lambda: (0,) * ndim)],
        out_specs=pl.BlockSpec(x.shape, lambda: (0,) * ndim),
        input_output_aliases={0: 0},
    )(x)


if __name__ == "__main__":
    # Shapes implied by SignalProcessingBase.test_forward:
    #   (batch=2, in_dim, in_channels); Identity => out_dim==in_dim, out_channels==in_channels
    batch, in_dim, in_channels = 2, 16, 4
    key = jax.random.PRNGKey(0)
    x = jax.random.normal(key, (batch, in_dim, in_channels), dtype=jnp.float32)

    y = identity_forward(x)
    jax.block_until_ready(y)

    assert y.shape == (batch, in_dim, in_channels), y.shape
    assert y.dtype == x.dtype
    assert jnp.array_equal(y, x), "Identity kernel output mismatch"

    print("KERNEL_OK")
</pallas_src>

<mosaic_0001>
module attributes {stable_mosaic.version = 11 : i64} {
  func.func @_copy_kernel(%arg0: i32, %arg1: memref<1x128xf32, #tpu.memory_space<vmem>>, %arg2: memref<1x128xf32, #tpu.memory_space<vmem>>) attributes {dimension_semantics = [#tpu.dimension_semantics<arbitrary>], iteration_bounds = array<i64: 1>, scalar_prefetch = 0 : i64, scratch_operands = 0 : i64, tpu.core_type = #tpu.core_type<tc>, window_params = [{transform_indices = @transform_0, window_bounds = array<i64: 1, 128>}, {transform_indices = @transform_1, window_bounds = array<i64: 1, 128>}]} {
    %c0 = arith.constant 0 : index
    %c0_0 = arith.constant 0 : index
    %0 = vector.load %arg1[%c0, %c0_0] : memref<1x128xf32, #tpu.memory_space<vmem>>, vector<1x128xf32>
    %c0_1 = arith.constant 0 : index
    %c0_2 = arith.constant 0 : index
    %1 = vector.load %arg2[%c0_1, %c0_2] : memref<1x128xf32, #tpu.memory_space<vmem>>, vector<1x128xf32>
    tpu.vector_store %arg2[%c0_1, %c0_2], %0 {strides = array<i32>} : memref<1x128xf32, #tpu.memory_space<vmem>>, vector<1x128xf32>,
    return
  }
  func.func @transform_0(%arg0: i32) -> (i32, i32) {
    %c0_i32 = arith.constant 0 : i32
    %c0_i32_0 = arith.constant 0 : i32
    return %arg0, %c0_i32 : i32, i32
  }
  func.func @transform_1(%arg0: i32) -> (i32, i32) {
    %c0_i32 = arith.constant 0 : i32
    %c0_i32_0 = arith.constant 0 : i32
    return %arg0, %c0_i32 : i32, i32
  }
}

</mosaic_0001>

<bundles_post_ra>
// kernel: tpu_custom_call.1
= control target key start
LH: loop header
LB: loop body
LE: loop exit
PB: predicated region body
PF: predicated region fallthrough
CT: control target
= control target key end

     0   :  { %6 = vsyncpa [#allocation3], 0  ;;  %s114_s0 = inlined_call_operand.hbm [shape: f32[1,128], index: 0, kind: input, shape index: {}, may-alias: {0,1}]   ;;  %s115_s1 = inlined_call_operand.hbm [shape: f32[1,128], index: 1, kind: output, shape index: {}, may-alias: {0,1}]  }
   0x1   :  { %7 = vsyncpa [#allocation4], 0  ;;  %s13_s8 = sshll.u32 %s114_s0, 4  ;;  %s96_s9 = smov [#allocation2]   ;;  %s14_s8 = int_to_ptr.hbm [resolvable:$true] %s13_s8 }
   0x2   :  { %s15_s10 = sshll.u32 %s96_s9, 4  ;;  %s16_s10 = int_to_ptr.vmem [resolvable:$true] %s15_s10 }
   0x3   :  { %18 = dma.hbm_to_vmem [thread:$0]  %s14_s8, 16, %s16_s10, [#allocation3]  }
   0x4   :  { %92 = dma.done.wait [#allocation3], 16  }
   0x5   :  { %93 = vsyncadd [#allocation3], 4294967280  ;;  %s97_s11 = smov [#allocation5]   ;;  %s32_s15 = sshll.u32 %s115_s1, 4  ;;  %v23_v0 = vld [vmem:[#allocation2] sm:$0x1]  ;;  %s33_s15 = int_to_ptr.hbm [resolvable:$true] %s32_s15 }
   0x6   :  { %s30_s12 = sshll.u32 %s97_s11, 4  ;;  %24 = vst [vmem:[#allocation5] sm:$0x1] %v23_v0  ;;  %s31_s12 = int_to_ptr.vmem [resolvable:$true] %s30_s12 }
   0x7   :  { %35 = dma.vmem_to_hbm [thread:$0]  %s31_s12, 16, %s33_s15, [#allocation4]  }
   0x8   :  { %94 = dma.done.wait [#allocation4], 16  }
   0x9   :  { %95 = vsyncadd [#allocation4], 4294967280 }
   0xa   :  { %40 = vsyncpa [#allocation3], 1 }
   0xb   :  { %41 = vsyncpa [#allocation4], 1 }

</bundles_post_ra>
